<compile_context>
chip_gen: v7x
topology: tpu7x:2x2x1
jax: 0.10.0
libtpu: 0.0.40
codegen_flags: <defaults>
</compile_context>

<pallas_src>
import functools

import jax
import jax.numpy as jnp
from jax import lax
from jax.experimental import pallas as pl
from jax.experimental.pallas import tpu as pltpu

KH = KW = 3


def relu_conv2d_kernel(x_ref, w_ref, o_ref, *, H, W):
    # x_ref: (1, Cin, P)        channel-major flattened input, P = H*W
    # w_ref: (KH, KW, Ct, Cin)  weight tile (Ct output channels)
    # o_ref: (1, Ct, P)         channel-major flattened output tile
    P = H * W
    Ct = o_ref.shape[1]

    x = jnp.maximum(x_ref[0], 0.0)  # ReLU on the input tile (Cin, P)

    # Output-column index per lane (for masking the w-direction boundary).
    col = lax.broadcasted_iota(jnp.int32, (Ct, P), 1) % W

    pad = jnp.zeros((Ct, W + 1), jnp.float32)  # covers max |shift| = W + 1

    acc = jnp.zeros((Ct, P), jnp.float32)
    for kh in range(KH):
        dh = kh - 1
        for kw in range(KW):
            dw = kw - 1
            s = dh * W + dw
            # Full-width matmul for this tap: (Ct, Cin) @ (Cin, P).
            r = jnp.dot(w_ref[kh, kw], x, preferred_element_type=jnp.float32)
            # Resolve the spatial offset on the small result: out[:, p] needs
            # r[:, p + s], with zeros where p + s falls outside [0, P)
            # (this also handles the h-direction image boundary).
            r_ext = jnp.concatenate([pad, r, pad], axis=1)          # (Ct, P+2W+2)
            r_s = lax.slice(r_ext, (0, W + 1 + s), (Ct, W + 1 + s + P))
            # w-direction boundary (row wrap-around in the flattened index).
            if dw == -1:
                r_s = jnp.where(col >= 1, r_s, 0.0)
            elif dw == 1:
                r_s = jnp.where(col <= W - 2, r_s, 0.0)
            acc = acc + r_s

    o_ref[0] = acc.astype(o_ref.dtype)


def relu_conv2d(x_nchw, w_oihw):
    """x_nchw: (N, Cin, H, W); w_oihw: (Cout, Cin, KH, KW) -> (N, Cout, H, W)."""
    N, Cin, H, W = x_nchw.shape
    Cout = w_oihw.shape[0]
    P = H * W

    cout_tile = 16 if Cout % 16 == 0 else Cout
    n_ct = Cout // cout_tile

    x_flat = x_nchw.reshape(N, Cin, P)                 # free bitcast reshape
    w_kkoc = jnp.transpose(w_oihw, (2, 3, 0, 1))       # (KH, KW, Cout, Cin), tiny

    kernel = functools.partial(relu_conv2d_kernel, H=H, W=W)

    out_flat = pl.pallas_call(
        kernel,
        out_shape=jax.ShapeDtypeStruct((N, Cout, P), x_nchw.dtype),
        grid=(N, n_ct),
        in_specs=[
            pl.BlockSpec((1, Cin, P), lambda n, j: (n, 0, 0)),
            pl.BlockSpec((KH, KW, cout_tile, Cin), lambda n, j: (0, 0, j, 0)),
        ],
        out_specs=pl.BlockSpec((1, cout_tile, P), lambda n, j: (n, j, 0)),
        compiler_params=pltpu.CompilerParams(
            dimension_semantics=("parallel", "parallel")),
    )(x_flat, w_kkoc)

    return out_flat.reshape(N, Cout, H, W)             # free bitcast reshape


if __name__ == "__main__":
    N, Cin, H, W = 1, 128, 14, 14
    Cout = 32

    key = jax.random.PRNGKey(0)
    kx, kw = jax.random.split(key)

    x = jax.random.normal(kx, (N, Cin, H, W), dtype=jnp.float32)
    # Deterministic Kaiming-uniform-like init for Conv2d weights (no bias).
    fan_in = Cin * KH * KW
    bound = (1.0 / fan_in) ** 0.5
    w = jax.random.uniform(kw, (Cout, Cin, KH, KW), dtype=jnp.float32,
                           minval=-bound, maxval=bound)

    out = relu_conv2d(x, w)
    out = jax.block_until_ready(out)
    assert out.shape == (N, Cout, H, W), out.shape

    # Reference check against XLA conv on ReLU'd input.
    ref = jax.lax.conv_general_dilated(
        jnp.maximum(x, 0.0), w,
        window_strides=(1, 1), padding=((1, 1), (1, 1)),
        dimension_numbers=("NCHW", "OIHW", "NCHW"))
    assert jnp.allclose(out, ref, atol=1e-3, rtol=1e-3), \
        float(jnp.max(jnp.abs(out - ref)))

    print("KERNEL_OK")
</pallas_src>

<mosaic_0001>
module attributes {stable_mosaic.version = 11 : i64} {
  func.func @relu_conv2d_kernel(%arg0: i32, %arg1: i32, %arg2: memref<1x128x196xf32, #tpu.memory_space<vmem>>, %arg3: memref<3x3x16x128xf32, #tpu.memory_space<vmem>>, %arg4: memref<1x16x196xf32, #tpu.memory_space<vmem>>) attributes {dimension_semantics = [#tpu.dimension_semantics<parallel>, #tpu.dimension_semantics<parallel>], iteration_bounds = array<i64: 1, 2>, scalar_prefetch = 0 : i64, scratch_operands = 0 : i64, tpu.core_type = #tpu.core_type<tc>, window_params = [{transform_indices = @transform_0, window_bounds = array<i64: 1, 128, 196>}, {transform_indices = @transform_1, window_bounds = array<i64: 3, 3, 16, 128>}, {transform_indices = @transform_2, window_bounds = array<i64: 1, 16, 196>}]} {
    %c0 = arith.constant 0 : index
    %c0_0 = arith.constant 0 : index
    %c0_1 = arith.constant 0 : index
    %0 = vector.load %arg2[%c0, %c0_0, %c0_1] : memref<1x128x196xf32, #tpu.memory_space<vmem>>, vector<1x128x196xf32>
    %1 = vector.shape_cast %0 : vector<1x128x196xf32> to vector<128x196xf32>
    %cst = arith.constant 0.000000e+00 : f32
    %2 = vector.broadcast %cst : f32 to vector<128x196xf32>
    %3 = arith.maximumf %1, %2 : vector<128x196xf32>
    %4 = tpu.iota {dimensions = array<i32: 1>} : vector<16x196xi32>
    %c14_i32 = arith.constant 14 : i32
    %c0_i32 = arith.constant 0 : i32
    %5 = arith.cmpi eq, %c14_i32, %c0_i32 : i32
    %c1_i32 = arith.constant 1 : i32
    %6 = arith.select %5, %c1_i32, %c14_i32 : i32
    %7 = vector.broadcast %6 : i32 to vector<16x196xi32>
    %8 = arith.remsi %4, %7 : vector<16x196xi32>
    %c0_i32_2 = arith.constant 0 : i32
    %9 = vector.broadcast %c0_i32_2 : i32 to vector<16x196xi32>
    %10 = arith.cmpi ne, %8, %9 : vector<16x196xi32>
    %c0_i32_3 = arith.constant 0 : i32
    %11 = vector.broadcast %c0_i32_3 : i32 to vector<16x196xi32>
    %12 = arith.cmpi slt, %8, %11 : vector<16x196xi32>
    %c0_i32_4 = arith.constant 0 : i32
    %13 = arith.cmpi slt, %6, %c0_i32_4 : i32
    %14 = vector.broadcast %13 : i1 to vector<16x196xi1>
    %15 = vector.broadcast %14 : vector<16x196xi1> to vector<16x196xi1>
    %16 = arith.xori %12, %15 : vector<16x196xi1>
    %17 = arith.andi %16, %10 : vector<16x196xi1>
    %18 = vector.broadcast %6 : i32 to vector<16x196xi32>
    %19 = arith.addi %8, %18 : vector<16x196xi32>
    %20 = arith.select %17, %19, %8 : vector<16x196xi1>, vector<16x196xi32>
    %cst_5 = arith.constant 0.000000e+00 : f32
    %21 = vector.broadcast %cst_5 : f32 to vector<16x15xf32>
    %cst_6 = arith.constant 0.000000e+00 : f32
    %22 = vector.broadcast %cst_6 : f32 to vector<16x196xf32>
    %c0_7 = arith.constant 0 : index
    %c0_8 = arith.constant 0 : index
    %c0_9 = arith.constant 0 : index
    %c0_10 = arith.constant 0 : index
    %23 = vector.load %arg3[%c0_7, %c0_8, %c0_9, %c0_10] : memref<3x3x16x128xf32, #tpu.memory_space<vmem>>, vector<1x1x16x128xf32>
    %24 = vector.shape_cast %23 : vector<1x1x16x128xf32> to vector<16x128xf32>
    %cst_11 = arith.constant dense<0.000000e+00> : vector<16x196xf32>
    %25 = tpu.matmul %24, %3, %cst_11 {dimension_numbers = #tpu.dot_dimension_numbers<[1], [0], [0], [1], [0, 0, 1, 1], [], []>} : vector<16x128xf32>, vector<128x196xf32>, vector<16x196xf32> -> vector<16x196xf32>
    %26 = tpu.concatenate %21, %25, %21 in 1 : vector<16x15xf32>, vector<16x196xf32>, vector<16x15xf32> -> vector<16x226xf32>
    %27 = vector.extract_strided_slice %26 {offsets = [0, 0], sizes = [16, 196], strides = [1, 1]} : vector<16x226xf32> to vector<16x196xf32>
    %c1_i32_12 = arith.constant 1 : i32
    %28 = vector.broadcast %c1_i32_12 : i32 to vector<16x196xi32>
    %29 = arith.cmpi sge, %20, %28 : vector<16x196xi32>
    %cst_13 = arith.constant 0.000000e+00 : f32
    %30 = vector.broadcast %cst_13 : f32 to vector<16x196xf32>
    %31 = arith.select %29, %27, %30 : vector<16x196xi1>, vector<16x196xf32>
    %32 = arith.addf %22, %31 : vector<16x196xf32>
    %c0_14 = arith.constant 0 : index
    %c1 = arith.constant 1 : index
    %c0_15 = arith.constant 0 : index
    %c0_16 = arith.constant 0 : index
    %33 = vector.load %arg3[%c0_14, %c1, %c0_15, %c0_16] : memref<3x3x16x128xf32, #tpu.memory_space<vmem>>, vector<1x1x16x128xf32>
    %34 = vector.shape_cast %33 : vector<1x1x16x128xf32> to vector<16x128xf32>
    %cst_17 = arith.constant dense<0.000000e+00> : vector<16x196xf32>
    %35 = tpu.matmul %34, %3, %cst_17 {dimension_numbers = #tpu.dot_dimension_numbers<[1], [0], [0], [1], [0, 0, 1, 1], [], []>} : vector<16x128xf32>, vector<128x196xf32>, vector<16x196xf32> -> vector<16x196xf32>
    %36 = tpu.concatenate %21, %35, %21 in 1 : vector<16x15xf32>, vector<16x196xf32>, vector<16x15xf32> -> vector<16x226xf32>
    %37 = vector.extract_strided_slice %36 {offsets = [0, 1], sizes = [16, 196], strides = [1, 1]} : vector<16x226xf32> to vector<16x196xf32>
    %38 = arith.addf %32, %37 : vector<16x196xf32>
    %c0_18 = arith.constant 0 : index
    %c2 = arith.constant 2 : index
    %c0_19 = arith.constant 0 : index
    %c0_20 = arith.constant 0 : index
    %39 = vector.load %arg3[%c0_18, %c2, %c0_19, %c0_20] : memref<3x3x16x128xf32, #tpu.memory_space<vmem>>, vector<1x1x16x128xf32>
    %40 = vector.shape_cast %39 : vector<1x1x16x128xf32> to vector<16x128xf32>
    %cst_21 = arith.constant dense<0.000000e+00> : vector<16x196xf32>
    %41 = tpu.matmul %40, %3, %cst_21 {dimension_numbers = #tpu.dot_dimension_numbers<[1], [0], [0], [1], [0, 0, 1, 1], [], []>} : vector<16x128xf32>, vector<128x196xf32>, vector<16x196xf32> -> vector<16x196xf32>
    %42 = tpu.concatenate %21, %41, %21 in 1 : vector<16x15xf32>, vector<16x196xf32>, vector<16x15xf32> -> vector<16x226xf32>
    %43 = vector.extract_strided_slice %42 {offsets = [0, 2], sizes = [16, 196], strides = [1, 1]} : vector<16x226xf32> to vector<16x196xf32>
    %c12_i32 = arith.constant 12 : i32
    %44 = vector.broadcast %c12_i32 : i32 to vector<16x196xi32>
    %45 = arith.cmpi sle, %20, %44 : vector<16x196xi32>
    %cst_22 = arith.constant 0.000000e+00 : f32
    %46 = vector.broadcast %cst_22 : f32 to vector<16x196xf32>
    %47 = arith.select %45, %43, %46 : vector<16x196xi1>, vector<16x196xf32>
    %48 = arith.addf %38, %47 : vector<16x196xf32>
    %c1_23 = arith.constant 1 : index
    %c0_24 = arith.constant 0 : index
    %c0_25 = arith.constant 0 : index
    %c0_26 = arith.constant 0 : index
    %49 = vector.load %arg3[%c1_23, %c0_24, %c0_25, %c0_26] : memref<3x3x16x128xf32, #tpu.memory_space<vmem>>, vector<1x1x16x128xf32>
    %50 = vector.shape_cast %49 : vector<1x1x16x128xf32> to vector<16x128xf32>
    %cst_27 = arith.constant dense<0.000000e+00> : vector<16x196xf32>
    %51 = tpu.matmul %50, %3, %cst_27 {dimension_numbers = #tpu.dot_dimension_numbers<[1], [0], [0], [1], [0, 0, 1, 1], [], []>} : vector<16x128xf32>, vector<128x196xf32>, vector<16x196xf32> -> vector<16x196xf32>
    %52 = tpu.concatenate %21, %51, %21 in 1 : vector<16x15xf32>, vector<16x196xf32>, vector<16x15xf32> -> vector<16x226xf32>
    %53 = vector.extract_strided_slice %52 {offsets = [0, 14], sizes = [16, 196], strides = [1, 1]} : vector<16x226xf32> to vector<16x196xf32>
    %c1_i32_28 = arith.constant 1 : i32
    %54 = vector.broadcast %c1_i32_28 : i32 to vector<16x196xi32>
    %55 = arith.cmpi sge, %20, %54 : vector<16x196xi32>
    %cst_29 = arith.constant 0.000000e+00 : f32
    %56 = vector.broadcast %cst_29 : f32 to vector<16x196xf32>
    %57 = arith.select %55, %53, %56 : vector<16x196xi1>, vector<16x196xf32>
    %58 = arith.addf %48, %57 : vector<16x196xf32>
    %c1_30 = arith.constant 1 : index
    %c1_31 = arith.constant 1 : index
    %c0_32 = arith.constant 0 : index
    %c0_33 = arith.constant 0 : index
    %59 = vector.load %arg3[%c1_30, %c1_31, %c0_32, %c0_33] : memref<3x3x16x128xf32, #tpu.memory_space<vmem>>, vector<1x1x16x128xf32>
    %60 = vector.shape_cast %59 : vector<1x1x16x128xf32> to vector<16x128xf32>
    %cst_34 = arith.constant dense<0.000000e+00> : vector<16x196xf32>
    %61 = tpu.matmul %60, %3, %cst_34 {dimension_numbers = #tpu.dot_dimension_numbers<[1], [0], [0], [1], [0, 0, 1, 1], [], []>} : vector<16x128xf32>, vector<128x196xf32>, vector<16x196xf32> -> vector<16x196xf32>
    %62 = tpu.concatenate %21, %61, %21 in 1 : vector<16x15xf32>, vector<16x196xf32>, vector<16x15xf32> -> vector<16x226xf32>
    %63 = vector.extract_strided_slice %62 {offsets = [0, 15], sizes = [16, 196], strides = [1, 1]} : vector<16x226xf32> to vector<16x196xf32>
    %64 = arith.addf %58, %63 : vector<16x196xf32>
    %c1_35 = arith.constant 1 : index
    %c2_36 = arith.constant 2 : index
    %c0_37 = arith.constant 0 : index
    %c0_38 = arith.constant 0 : index
    %65 = vector.load %arg3[%c1_35, %c2_36, %c0_37, %c0_38] : memref<3x3x16x128xf32, #tpu.memory_space<vmem>>, vector<1x1x16x128xf32>
    %66 = vector.shape_cast %65 : vector<1x1x16x128xf32> to vector<16x128xf32>
    %cst_39 = arith.constant dense<0.000000e+00> : vector<16x196xf32>
    %67 = tpu.matmul %66, %3, %cst_39 {dimension_numbers = #tpu.dot_dimension_numbers<[1], [0], [0], [1], [0, 0, 1, 1], [], []>} : vector<16x128xf32>, vector<128x196xf32>, vector<16x196xf32> -> vector<16x196xf32>
    %68 = tpu.concatenate %21, %67, %21 in 1 : vector<16x15xf32>, vector<16x196xf32>, vector<16x15xf32> -> vector<16x226xf32>
    %69 = vector.extract_strided_slice %68 {offsets = [0, 16], sizes = [16, 196], strides = [1, 1]} : vector<16x226xf32> to vector<16x196xf32>
    %c12_i32_40 = arith.constant 12 : i32
    %70 = vector.broadcast %c12_i32_40 : i32 to vector<16x196xi32>
    %71 = arith.cmpi sle, %20, %70 : vector<16x196xi32>
    %cst_41 = arith.constant 0.000000e+00 : f32
    %72 = vector.broadcast %cst_41 : f32 to vector<16x196xf32>
    %73 = arith.select %71, %69, %72 : vector<16x196xi1>, vector<16x196xf32>
    %74 = arith.addf %64, %73 : vector<16x196xf32>
    %c2_42 = arith.constant 2 : index
    %c0_43 = arith.constant 0 : index
    %c0_44 = arith.constant 0 : index
    %c0_45 = arith.constant 0 : index
    %75 = vector.load %arg3[%c2_42, %c0_43, %c0_44, %c0_45] : memref<3x3x16x128xf32, #tpu.memory_space<vmem>>, vector<1x1x16x128xf32>
    %76 = vector.shape_cast %75 : vector<1x1x16x128xf32> to vector<16x128xf32>
    %cst_46 = arith.constant dense<0.000000e+00> : vector<16x196xf32>
    %77 = tpu.matmul %76, %3, %cst_46 {dimension_numbers = #tpu.dot_dimension_numbers<[1], [0], [0], [1], [0, 0, 1, 1], [], []>} : vector<16x128xf32>, vector<128x196xf32>, vector<16x196xf32> -> vector<16x196xf32>
    %78 = tpu.concatenate %21, %77, %21 in 1 : vector<16x15xf32>, vector<16x196xf32>, vector<16x15xf32> -> vector<16x226xf32>
    %79 = vector.extract_strided_slice %78 {offsets = [0, 28], sizes = [16, 196], strides = [1, 1]} : vector<16x226xf32> to vector<16x196xf32>
    %c1_i32_47 = arith.constant 1 : i32
    %80 = vector.broadcast %c1_i32_47 : i32 to vector<16x196xi32>
    %81 = arith.cmpi sge, %20, %80 : vector<16x196xi32>
    %cst_48 = arith.constant 0.000000e+00 : f32
    %82 = vector.broadcast %cst_48 : f32 to vector<16x196xf32>
    %83 = arith.select %81, %79, %82 : vector<16x196xi1>, vector<16x196xf32>
    %84 = arith.addf %74, %83 : vector<16x196xf32>
    %c2_49 = arith.constant 2 : index
    %c1_50 = arith.constant 1 : index
    %c0_51 = arith.constant 0 : index
    %c0_52 = arith.constant 0 : index
    %85 = vector.load %arg3[%c2_49, %c1_50, %c0_51, %c0_52] : memref<3x3x16x128xf32, #tpu.memory_space<vmem>>, vector<1x1x16x128xf32>
    %86 = vector.shape_cast %85 : vector<1x1x16x128xf32> to vector<16x128xf32>
    %cst_53 = arith.constant dense<0.000000e+00> : vector<16x196xf32>
    %87 = tpu.matmul %86, %3, %cst_53 {dimension_numbers = #tpu.dot_dimension_numbers<[1], [0], [0], [1], [0, 0, 1, 1], [], []>} : vector<16x128xf32>, vector<128x196xf32>, vector<16x196xf32> -> vector<16x196xf32>
    %88 = tpu.concatenate %21, %87, %21 in 1 : vector<16x15xf32>, vector<16x196xf32>, vector<16x15xf32> -> vector<16x226xf32>
    %89 = vector.extract_strided_slice %88 {offsets = [0, 29], sizes = [16, 196], strides = [1, 1]} : vector<16x226xf32> to vector<16x196xf32>
    %90 = arith.addf %84, %89 : vector<16x196xf32>
    %c2_54 = arith.constant 2 : index
    %c2_55 = arith.constant 2 : index
    %c0_56 = arith.constant 0 : index
    %c0_57 = arith.constant 0 : index
    %91 = vector.load %arg3[%c2_54, %c2_55, %c0_56, %c0_57] : memref<3x3x16x128xf32, #tpu.memory_space<vmem>>, vector<1x1x16x128xf32>
    %92 = vector.shape_cast %91 : vector<1x1x16x128xf32> to vector<16x128xf32>
    %cst_58 = arith.constant dense<0.000000e+00> : vector<16x196xf32>
    %93 = tpu.matmul %92, %3, %cst_58 {dimension_numbers = #tpu.dot_dimension_numbers<[1], [0], [0], [1], [0, 0, 1, 1], [], []>} : vector<16x128xf32>, vector<128x196xf32>, vector<16x196xf32> -> vector<16x196xf32>
    %94 = tpu.concatenate %21, %93, %21 in 1 : vector<16x15xf32>, vector<16x196xf32>, vector<16x15xf32> -> vector<16x226xf32>
    %95 = vector.extract_strided_slice %94 {offsets = [0, 30], sizes = [16, 196], strides = [1, 1]} : vector<16x226xf32> to vector<16x196xf32>
    %c12_i32_59 = arith.constant 12 : i32
    %96 = vector.broadcast %c12_i32_59 : i32 to vector<16x196xi32>
    %97 = arith.cmpi sle, %20, %96 : vector<16x196xi32>
    %cst_60 = arith.constant 0.000000e+00 : f32
    %98 = vector.broadcast %cst_60 : f32 to vector<16x196xf32>
    %99 = arith.select %97, %95, %98 : vector<16x196xi1>, vector<16x196xf32>
    %100 = arith.addf %90, %99 : vector<16x196xf32>
    %c0_61 = arith.constant 0 : index
    %c0_62 = arith.constant 0 : index
    %c0_63 = arith.constant 0 : index
    %101 = vector.load %arg4[%c0_61, %c0_62, %c0_63] : memref<1x16x196xf32, #tpu.memory_space<vmem>>, vector<1x16x196xf32>
    %102 = vector.shape_cast %101 : vector<1x16x196xf32> to vector<16x196xf32>
    %103 = vector.shape_cast %100 : vector<16x196xf32> to vector<1x16x196xf32>
    tpu.vector_store %arg4[%c0_61, %c0_62, %c0_63], %103 {strides = array<i32>} : memref<1x16x196xf32, #tpu.memory_space<vmem>>, vector<1x16x196xf32>,
    return
  }
  func.func @transform_0(%arg0: i32, %arg1: i32) -> (i32, i32, i32) {
    %c0_i32 = arith.constant 0 : i32
    %c0_i32_0 = arith.constant 0 : i32
    %c0_i32_1 = arith.constant 0 : i32
    return %arg0, %c0_i32, %c0_i32_0 : i32, i32, i32
  }
  func.func @transform_1(%arg0: i32, %arg1: i32) -> (i32, i32, i32, i32) {
    %c0_i32 = arith.constant 0 : i32
    %c0_i32_0 = arith.constant 0 : i32
    %c0_i32_1 = arith.constant 0 : i32
    %c0_i32_2 = arith.constant 0 : i32
    return %c0_i32, %c0_i32_0, %arg1, %c0_i32_1 : i32, i32, i32, i32
  }
  func.func @transform_2(%arg0: i32, %arg1: i32) -> (i32, i32, i32) {
    %c0_i32 = arith.constant 0 : i32
    %c0_i32_0 = arith.constant 0 : i32
    return %arg0, %arg1, %c0_i32 : i32, i32, i32
  }
}

</mosaic_0001>

<bundles_post_ra>
// kernel: tpu_custom_call.1
= control target key start
LH: loop header
LB: loop body
LE: loop exit
PB: predicated region body
PF: predicated region fallthrough
CT: control target
= control target key end

     0   :  { %7 = vsyncpa [#allocation4], 0  ;;  %s2814_s0 = inlined_call_operand.vmem [shape: f32[1,128,196], index: 0, kind: input, shape index: {}]   ;;  %s2815_s1 = inlined_call_operand.vmem [shape: f32[3,3,32,128], index: 1, kind: input, shape index: {}]   ;;  %s2816_s2 = inlined_call_operand.hbm [shape: f32[1,32,196], index: 2, kind: output, shape index: {}]  }
   0x1   :  { %9 = vsyncpa [#allocation4 + $0x1], 0  ;;  %s2158_s9 = smov 0   ;;  %s2160_s10 = smov 0  }
   0x2   :  { %s2162_s11 = smov 0   ;;  %s2164_s12 = smov 0  }
   0x3   :  { %s2166_s13 = smov 0   ;;  %s2168_s14 = smov 0  }
   0x4 LB: > { %s1637_s15 = sadd.s32 4294967295, %s2127_s14   ;;  %s1638_s16 = sadd.s32 4294967294, %s2127_s14   ;;  %s2127_s14 = sphi %s2168_s14, %s15_s14   ;;  %s2123_s13 = sphi %s2166_s13, %s2823_s13   ;;  %s2119_s12 = sphi %s2164_s12, %s2822_s12   ;;  %s2115_s11 = sphi %s2162_s11, %s2821_s11   ;;  %s2111_s10 = sphi %s2160_s10, %s2820_s10   ;;  %s2107_s9 = sphi %s2158_s9, %s2819_s9  }
   0x5   : > { %s24_s17 = sadd.s32 1, %s2123_s13  ;;  %s60_s18 = sadd.s32 1, %s2115_s11 }
   0x6   : > { %p25_p0 = scmp.ge.s32.totalorder %s24_s17, 2  ;;  %p67_p1 = scmp.ne.s32.totalorder %s2115_s11, %s2111_s10 }
   0x7   : > { %p68_p2 = scmp.eq.s32.totalorder %s2127_s14, 0  ;;  %p99_p3 = scmp.eq.s32.totalorder %s1637_s15, 1 }
   0x8   : > { %s2825_s17 = smov (%p25_p0, %s24_s17), 0  ;;  %p104_p6 = scmp.ne.s32.totalorder %s2111_s10, %s2107_s9 }
   0x9   : > { %p69_p4 = por %p68_p2, %p67_p1  ;;  %p2197_p5 = por %p99_p3, %p67_p1 }
   0xa   : > { %s57_s20 = ssub.s32 %s2123_s13, %s2825_s17  ;;  %p105_p8 = scmp.eq.s32.totalorder %s1638_s16, 1 }
   0xb   : > { %p58_p7 = scmp.eq.s32.totalorder %s57_s20, 0  ;;  %p1641_p10 = scmp.ge.s32.totalorder %s2127_s14, 2 }
   0xc   : > { %p2208_p9 = por %p105_p8, %p104_p6 }
   0xd   : > { %s2206_s21 = scalar_select %p58_p7, %s2115_s11, %s60_s18  }
   0xe   : > { %129 = sbr.rel (%p1641_p10) target bundleno = 34 (0x22), region = 20 }
  0x15   : > { %132 = sbr.rel (!%p69_p4) target bundleno = 34 (0x22), region = 24  ;;  %s134_s23 = sand.u32 (%p69_p4), 1, %s2115_s11  }
  0x16   : > { %s1668_s24 = sshll.u32 (%p69_p4), %s2123_s13, 4  ;;  %s1975_s25 = smul.u32 (%p69_p4), 144, %s134_s23 }
  0x17   : > { %s2220_s28 = scalar_lea.vmem (%p69_p4), %s2815_s1, %s1668_s24 }
  0x18   : > { %v201_v0 = vld [vmem:[%s2220_s28] sm:$0xff] (%p69_p4)  ;;  %v203_v1 = vld [vmem:[%s2220_s28 + $0x8] sm:$0xff] (%p69_p4)  ;;  %s136_s29 = scalar_lea.vmem (%p69_p4), [#allocation2], %s1975_s25 }
  0x19   : > { %v205_v2 = vld [vmem:[%s2220_s28 + $0x20] sm:$0xff] (%p69_p4)  ;;  %v207_v3 = vld [vmem:[%s2220_s28 + $0x28] sm:$0xff] (%p69_p4)  ;;  %202 = vst [vmem:[%s136_s29] sm:$0xff] (%p69_p4), %v201_v0  ;;  %204 = vst [vmem:[%s136_s29 + $0x8] sm:$0xff] (%p69_p4), %v203_v1 }
  0x1a   : > { %v209_v4 = vld [vmem:[%s2220_s28 + $0x40] sm:$0xff] (%p69_p4)  ;;  %v211_v5 = vld [vmem:[%s2220_s28 + $0x48] sm:$0xff] (%p69_p4)  ;;  %206 = vst [vmem:[%s136_s29 + $0x10] sm:$0xff] (%p69_p4), %v205_v2  ;;  %208 = vst [vmem:[%s136_s29 + $0x18] sm:$0xff] (%p69_p4), %v207_v3 }
  0x1b   : > { %210 = vst [vmem:[%s136_s29 + $0x20] sm:$0xff] (%p69_p4), %v209_v4  ;;  %212 = vst [vmem:[%s136_s29 + $0x28] sm:$0xff] (%p69_p4), %v211_v5  ;;  %v213_v6 = vld [vmem:[%s2220_s28 + $0x60] sm:$0xff] (%p69_p4)  ;;  %v215_v7 = vld [vmem:[%s2220_s28 + $0x68] sm:$0xff] (%p69_p4) }
  0x1c   : > { %v217_v8 = vld [vmem:[%s2220_s28 + $0x80] sm:$0xff]  ;;  %214 = vst [vmem:[%s136_s29 + $0x30] sm:$0xff] %v213_v6  ;;  %216 = vst [vmem:[%s136_s29 + $0x38] sm:$0xff] %v215_v7  ;;  %v219_v9 = vld [vmem:[%s2220_s28 + $0x88] sm:$0xff] }
  0x1d   : > { %218 = vst [vmem:[%s136_s29 + $0x40] sm:$0xff] %v217_v8  ;;  %v221_v10 = vld [vmem:[%s2220_s28 + $0xa0] sm:$0xff]  ;;  %v223_v11 = vld [vmem:[%s2220_s28 + $0xa8] sm:$0xff]  ;;  %220 = vst [vmem:[%s136_s29 + $0x48] sm:$0xff] %v219_v9 }
  0x1e   : > { %222 = vst [vmem:[%s136_s29 + $0x50] sm:$0xff] %v221_v10  ;;  %224 = vst [vmem:[%s136_s29 + $0x58] sm:$0xff] %v223_v11  ;;  %v225_v12 = vld [vmem:[%s2220_s28 + $0xc0] sm:$0xff]  ;;  %v227_v13 = vld [vmem:[%s2220_s28 + $0xc8] sm:$0xff] }
  0x1f   : > { %v229_v14 = vld [vmem:[%s2220_s28 + $0xe0] sm:$0xff]  ;;  %226 = vst [vmem:[%s136_s29 + $0x60] sm:$0xff] %v225_v12  ;;  %228 = vst [vmem:[%s136_s29 + $0x68] sm:$0xff] %v227_v13  ;;  %v231_v15 = vld [vmem:[%s2220_s28 + $0xe8] sm:$0xff] }
  0x20   : > { %230 = vst [vmem:[%s136_s29 + $0x70] sm:$0xff] %v229_v14  ;;  %v233_v16 = vld [vmem:[%s2220_s28 + $0x100] sm:$0xff]  ;;  %v235_v17 = vld [vmem:[%s2220_s28 + $0x108] sm:$0xff]  ;;  %232 = vst [vmem:[%s136_s29 + $0x78] sm:$0xff] %v231_v15 }
  0x21   : > { %234 = vst [vmem:[%s136_s29 + $0x80] sm:$0xff] %v233_v16  ;;  %236 = vst [vmem:[%s136_s29 + $0x88] sm:$0xff] %v235_v17 }
  0x22 PF: > { %p1644_p11 = scmp.ge.s32.totalorder %s2127_s14, 1  ;;  %p241_p12 = scmp.lt.s32.totalorder %s2127_s14, 3 }
  0x24   : > { %p242_p13 = pnand %p1644_p11, %p241_p12 }
  0x25   : > { %v282_v18 = vld [vmem:[%s2814_s0 + $0x8] sm:$0xff] (!%p242_p13)  ;;  %v284_v19 = vld [vmem:[%s2814_s0 + $0x18] sm:$0xff] (!%p242_p13)  ;;  %v281_v20 = vld [vmem:[%s2814_s0] sm:$0xff] (!%p242_p13)  ;;  %v2129_v27 = vmov (!%p242_p13), 0.0   ;;  %s2389_s20 = sand.u32 (!%p242_p13), 1, %s2111_s10   ;;  %s2130_s25 = smov (!%p242_p13), 15  }
  0x26   : > { %245 = sbr.rel (%p242_p13) target bundleno = 670 (0x29e), region = 62  ;;  %v314_v21 = vmax.f32 (!%p242_p13), %v282_v18, 0.0  ;;  %v316_v22 = vmax.f32 (!%p242_p13), %v284_v19, 0.0  ;;  %v283_v23 = vld [vmem:[%s2814_s0 + $0x10] sm:$0xff] (!%p242_p13)  ;;  %v313_v24 = vmax.f32 (!%p242_p13), %v281_v20, 0.0  ;;  %v286_v25 = vld [vmem:[%s2814_s0 + $0x28] sm:$0xff] (!%p242_p13)  ;;  %452 = vmatprep.mubr.f32.mxu0 (!%p242_p13), %v2129_v27  ;;  %566 = vmatprep.mubr.f32.mxu1 (!%p242_p13), %v2129_v27 }
  0x27   : > { %v288_v26 = vld [vmem:[%s2814_s0 + $0x38] sm:$0xff] (!%p242_p13)  ;;  %v315_v28 = vmax.f32 (!%p242_p13), %v283_v23, 0.0  ;;  %v318_v29 = vmax.f32 (!%p242_p13), %v286_v25, 0.0  ;;  %v285_v31 = vld [vmem:[%s2814_s0 + $0x20] sm:$0xff] (!%p242_p13)  ;;  %v287_v32 = vld [vmem:[%s2814_s0 + $0x30] sm:$0xff] (!%p242_p13)  ;;  %s1976_s23 = smul.u32 (!%p242_p13), 144, %s2389_s20 }
  0x28   : > { %v320_v30 = vmax.f32 (!%p242_p13), %v288_v26, 0.0  ;;  %v290_v33 = vld [vmem:[%s2814_s0 + $0x48] sm:$0xff] (!%p242_p13)  ;;  %v2271_v34 = vpack.c.bf16 (!%p242_p13), %v316_v22, %v314_v21  ;;  %v317_v35 = vmax.f32 (!%p242_p13), %v285_v31, 0.0  ;;  %v319_v36 = vmax.f32 (!%p242_p13), %v287_v32, 0.0  ;;  %v292_v37 = vld [vmem:[%s2814_s0 + $0x58] sm:$0xff] (!%p242_p13)  ;;  %v289_v39 = vld [vmem:[%s2814_s0 + $0x40] sm:$0xff] (!%p242_p13) }
  0x29   : > { %v322_v38 = vmax.f32 (!%p242_p13), %v290_v33, 0.0  ;;  %v291_v40 = vld [vmem:[%s2814_s0 + $0x50] sm:$0xff] (!%p242_p13)  ;;  %v2282_v41 = vpack.c.bf16 (!%p242_p13), %v315_v28, %v313_v24  ;;  %v324_v43 = vmax.f32 (!%p242_p13), %v292_v37, 0.0  ;;  %v294_v44 = vld [vmem:[%s2814_s0 + $0x68] sm:$0xff] (!%p242_p13)  ;;  %v296_v45 = vld [vmem:[%s2814_s0 + $0x78] sm:$0xff] (!%p242_p13)  ;;  %v321_v47 = vmax.f32 (!%p242_p13), %v289_v39, 0.0 }
  0x2a   : > { %v2284_v42 = vpack.c.bf16 (!%p242_p13), %v320_v30, %v318_v29  ;;  %1672 = vmatprep.subr.bf16.mxu0 (!%p242_p13), %v2271_v34  ;;  %1704 = vmatprep.subr.bf16.mxu1 (!%p242_p13), %v2271_v34  ;;  %v2296_v46 = vpack.c.bf16 (!%p242_p13), %v319_v36, %v317_v35  ;;  %v323_v48 = vmax.f32 (!%p242_p13), %v291_v40, 0.0  ;;  %v326_v50 = vmax.f32 (!%p242_p13), %v294_v44, 0.0  ;;  %v293_v52 = vld [vmem:[%s2814_s0 + $0x60] sm:$0xff] (!%p242_p13)  ;;  %v295_v53 = vld [vmem:[%s2814_s0 + $0x70] sm:$0xff] (!%p242_p13)  ;;  %v298_v54 = vld [vmem:[%s2814_s0 + $0x88] sm:$0xff] (!%p242_p13)  ;;  %s2408_s24 = scalar_lea.vmem (!%p242_p13), [#allocation2], %s1976_s23 }
  0x2b   : > { %1674 = vmatpush1.bf16.msra.mxu0 (!%p242_p13), %v2282_v41  ;;  %1706 = vmatpush1.bf16.msra.mxu1 (!%p242_p13), %v2282_v41  ;;  %v2300_v49 = vpack.c.bf16 (!%p242_p13), %v324_v43, %v322_v38  ;;  %v328_v51 = vmax.f32 (!%p242_p13), %v296_v45, 0.0  ;;  %v300_v55 = vld [vmem:[%s2814_s0 + $0x98] sm:$0xff] (!%p242_p13)  ;;  %v325_v57 = vmax.f32 (!%p242_p13), %v293_v52, 0.0  ;;  %v327_v58 = vmax.f32 (!%p242_p13), %v295_v53, 0.0  ;;  %v297_v62 = vld [vmem:[%s2814_s0 + $0x80] sm:$0xff] (!%p242_p13)  ;;  %v299_v63 = vld [vmem:[%s2814_s0 + $0x90] sm:$0xff] (!%p242_p13) }
  0x2c   : > { %1676 = vmatprep.subr.bf16.mxu0 (!%p242_p13), %v2284_v42  ;;  %1708 = vmatprep.subr.bf16.mxu1 (!%p242_p13), %v2284_v42  ;;  %v2316_v56 = vpack.c.bf16 (!%p242_p13), %v323_v48, %v321_v47  ;;  %v330_v60 = vmax.f32 (!%p242_p13), %v298_v54, 0.0  ;;  %v332_v61 = vmax.f32 (!%p242_p13), %v300_v55, 0.0  ;;  %v302_v0 = vld [vmem:[%s2814_s0 + $0xa8] sm:$0xff] (!%p242_p13)  ;;  %v304_v1 = vld [vmem:[%s2814_s0 + $0xb8] sm:$0xff] (!%p242_p13)  ;;  %v329_v3 = vmax.f32 (!%p242_p13), %v297_v62, 0.0  ;;  %v301_v8 = vld [vmem:[%s2814_s0 + $0xa0] sm:$0xff] (!%p242_p13) }
  0x2d   : > { %v2320_v59 = vpack.c.bf16 %v328_v51, %v326_v50  ;;  %v2336_v2 = vpack.c.bf16 %v327_v58, %v325_v57  ;;  %v331_v4 = vmax.f32 %v299_v63, 0.0  ;;  %v334_v6 = vmax.f32 %v302_v0, 0.0  ;;  %v303_v9 = vld [vmem:[%s2814_s0 + $0xb0] sm:$0xff]  ;;  %v306_v10 = vld [vmem:[%s2814_s0 + $0xc8] sm:$0xff]  ;;  %v308_v11 = vld [vmem:[%s2814_s0 + $0xd8] sm:$0xff]  ;;  %s2131_s26 = smov 127  }
  0x2e   : > { %v2340_v5 = vpack.c.bf16 %v332_v61, %v330_v60  ;;  %v336_v7 = vmax.f32 %v304_v1, 0.0  ;;  %v333_v13 = vmax.f32 %v301_v8, 0.0  ;;  %v335_v14 = vmax.f32 %v303_v9, 0.0  ;;  %v305_v18 = vld [vmem:[%s2814_s0 + $0xc0] sm:$0xff]  ;;  %v307_v19 = vld [vmem:[%s2814_s0 + $0xd0] sm:$0xff]  ;;  %v310_v20 = vld [vmem:[%s2814_s0 + $0xe8] sm:$0xff] }
  0x2f   : > { %1678 = vmatpush1.bf16.msra.mxu0 %v2296_v46  ;;  %1710 = vmatpush1.bf16.msra.mxu1 %v2296_v46  ;;  %v2356_v12 = vpack.c.bf16 %v331_v4, %v329_v3  ;;  %v338_v16 = vmax.f32 %v306_v10, 0.0  ;;  %v340_v17 = vmax.f32 %v308_v11, 0.0  ;;  %v312_v21 = vld [vmem:[%s2814_s0 + $0xf8] sm:$0xff]  ;;  %v337_v23 = vmax.f32 %v305_v18, 0.0  ;;  %v309_v29 = vld [vmem:[%s2814_s0 + $0xe0] sm:$0xff]  ;;  %v311_v30 = vld [vmem:[%s2814_s0 + $0xf0] sm:$0xff] }
  0x30   : > { %1680 = vmatprep.subr.bf16.mxu0 %v2300_v49  ;;  %1712 = vmatprep.subr.bf16.mxu1 %v2300_v49  ;;  %v2360_v15 = vpack.c.bf16 %v336_v7, %v334_v6  ;;  %v2376_v22 = vpack.c.bf16 %v335_v14, %v333_v13  ;;  %v339_v24 = vmax.f32 %v307_v19, 0.0  ;;  %v342_v26 = vmax.f32 %v310_v20, 0.0  ;;  %v386_v37 = vld [vmem:[%s2408_s24] sm:$0xff]  ;;  %v1646_v38 = vld [vmem:[%s2408_s24 + $0x10] sm:$0xff]  ;;  %v1647_v39 = vld [vmem:[%s2408_s24 + $0x18] sm:$0xff]  ;;  %s2132_s27 = smov 126  }
  0x31   : > { %v2380_v25 = vpack.c.bf16 %v340_v17, %v338_v16  ;;  %v344_v28 = vmax.f32 %v312_v21, 0.0  ;;  %v341_v32 = vmax.f32 %v309_v29, 0.0  ;;  %v343_v33 = vmax.f32 %v311_v30, 0.0  ;;  %v387_v40 = vld [vmem:[%s2408_s24 + $0x8] sm:$0xff]  ;;  %v1648_v43 = vld [vmem:[%s2408_s24 + $0x20] sm:$0xff]  ;;  %v1650_v44 = vld [vmem:[%s2408_s24 + $0x30] sm:$0xff] }
  0x32   : > { %v2393_v31 = vpack.c.bf16 %v339_v24, %v337_v23  ;;  %v1649_v45 = vld [vmem:[%s2408_s24 + $0x28] sm:$0xff]  ;;  %v1651_v47 = vld [vmem:[%s2408_s24 + $0x38] sm:$0xff]  ;;  %v1652_v48 = vld [vmem:[%s2408_s24 + $0x40] sm:$0xff]  ;;  %vm477_vm0 = vcmask 121856   ;;  %vm486_vm1 = vcmask 678912   ;;  %s2133_s28 = smov 114  }
  0x33   : > { %1682 = vmatpush1.bf16.msra.mxu0 %v2316_v56  ;;  %1714 = vmatpush1.bf16.msra.mxu1 %v2316_v56  ;;  %v2397_v35 = vpack.c.bf16 %v344_v28, %v342_v26  ;;  %v2402_v36 = vpack.c.bf16 %v343_v33, %v341_v32  ;;  %v1654_v50 = vld [vmem:[%s2408_s24 + $0x50] sm:$0xff]  ;;  %v1653_v51 = vld [vmem:[%s2408_s24 + $0x48] sm:$0xff]  ;;  %v1655_v52 = vld [vmem:[%s2408_s24 + $0x58] sm:$0xff]  ;;  %s2134_s29 = smov 113   ;;  %s2135_s30 = smov 112   ;;  %vm613_vm12 = vcmask 1039360  }
  0x34   : > { %1684 = vmatprep.subr.bf16.mxu0 %v2320_v59  ;;  %1716 = vmatprep.subr.bf16.mxu1 %v2320_v59  ;;  %v1656_v53 = vld [vmem:[%s2408_s24 + $0x60] sm:$0xff]  ;;  %v1658_v54 = vld [vmem:[%s2408_s24 + $0x70] sm:$0xff]  ;;  %v1657_v55 = vld [vmem:[%s2408_s24 + $0x68] sm:$0xff]  ;;  %s2137_s3 = smov 100   ;;  %s2138_s4 = smov 99   ;;  %vm740_vm13 = vcmask 1031168  }
  0x35   : > { %v1659_v57 = vld [vmem:[%s2408_s24 + $0x78] sm:$0xff]  ;;  %s2139_s5 = smov 98   ;;  %vm869_vm15 = vcmask 932864   ;;  %s1645_s6 = sshll.u32 %s2389_s20, 5 }
  0x36   : > { %s273_s7 = scalar_lea.vmem [#allocation3], %s1645_s6  ;;  %s1670_s15 = sshll.u32 %s2119_s12, 9 }
  0x37   : > { %1686 = vmatpush1.bf16.msra.mxu0 %v2336_v2  ;;  %1718 = vmatpush1.bf16.msra.mxu1 %v2336_v2  ;;  %s1543_s8 = sshll.u32 %s273_s7, 4  ;;  %s2764_s18 = scalar_lea.hbm %s2816_s2, %s1670_s15  ;;  %s2754_s8 = int_to_ptr.vmem [resolvable:$true] %s1543_s8 }
  0x38   : > { %1688 = vmatprep.subr.bf16.mxu0 %v2340_v5  ;;  %1720 = vmatprep.subr.bf16.mxu1 %v2340_v5  ;;  %s1527_s23 = scalar_lea.sflag [#allocation4], %s2389_s20 }
  0x3b   : > { %1690 = vmatpush1.bf16.msra.mxu0 %v2356_v12  ;;  %1722 = vmatpush1.bf16.msra.mxu1 %v2356_v12 }
  0x3c   : > { %1692 = vmatprep.subr.bf16.mxu0 %v2360_v15  ;;  %1724 = vmatprep.subr.bf16.mxu1 %v2360_v15 }
  0x3f   : > { %1694 = vmatpush1.bf16.msra.mxu0 %v2376_v22  ;;  %1726 = vmatpush1.bf16.msra.mxu1 %v2376_v22 }
  0x40   : > { %1696 = vmatprep.subr.bf16.mxu0 %v2380_v25  ;;  %1728 = vmatprep.subr.bf16.mxu1 %v2380_v25 }
  0x43   : > { %1698 = vmatpush1.bf16.msra.mxu0 %v2393_v31  ;;  %1730 = vmatpush1.bf16.msra.mxu1 %v2393_v31 }
  0x44   : > { %1700 = vmatprep.subr.bf16.mxu0 %v2397_v35  ;;  %1732 = vmatprep.subr.bf16.mxu1 %v2397_v35 }
  0x47   : > { %1702 = vmatpush1.bf16.msra.mxu0 %v2402_v36  ;;  %1734 = vmatpush1.bf16.msra.mxu1 %v2402_v36 }
  0x48   : > { %1736 = vmatprep.subr.bf16.mxu0 %v2271_v34  ;;  %1768 = vmatprep.subr.bf16.mxu1 %v2271_v34 }
  0x4a   : > { %453 = vmatmul.mubr.f32.vlgmr.msra.gmra.mrb[0].mxu0 %v386_v37  ;;  %567 = vmatmul.mubr.f32.vlgmr.msra.gmra.mrb[0].mxu1 %v1646_v38 }
  0x4b   : > { %1738 = vmatpush1.bf16.msra.mxu0 %v2282_v41  ;;  %1770 = vmatpush1.bf16.msra.mxu1 %v2282_v41 }
  0x4c   : > { %1740 = vmatprep.subr.bf16.mxu0 %v2284_v42  ;;  %1772 = vmatprep.subr.bf16.mxu1 %v2284_v42 }
  0x4d   : > { %572 = vmatprep.mubr.f32.mxu1 %v2129_v27  ;;  %458 = vmatprep.mubr.f32.mxu0 %v2129_v27 }
  0x4e   : > { %573 = vmatmul.mubr.f32.gmra.mrb[2].mxu1 %v1647_v39  ;;  %459 = vmatmul.mubr.f32.gmra.mrb[2].mxu0 %v387_v40 }
  0x4f   : > { %1742 = vmatpush1.bf16.msra.mxu0 %v2296_v46  ;;  %1774 = vmatpush1.bf16.msra.mxu1 %v2296_v46 }
  0x50   : > { %1744 = vmatprep.subr.bf16.mxu0 %v2300_v49  ;;  %1776 = vmatprep.subr.bf16.mxu1 %v2300_v49 }
  0x51   : > { %691 = vmatprep.mubr.f32.mxu0 %v2129_v27  ;;  %822 = vmatprep.mubr.f32.mxu1 %v2129_v27 }
  0x53   : > { %1746 = vmatpush1.bf16.msra.mxu0 %v2316_v56  ;;  %1778 = vmatpush1.bf16.msra.mxu1 %v2316_v56 }
  0x54   : > { %1748 = vmatprep.subr.bf16.mxu0 %v2320_v59  ;;  %1780 = vmatprep.subr.bf16.mxu1 %v2320_v59 }
  0x57   : > { %1750 = vmatpush1.bf16.msra.mxu0 %v2336_v2  ;;  %1782 = vmatpush1.bf16.msra.mxu1 %v2336_v2 }
  0x58   : > { %1752 = vmatprep.subr.bf16.mxu0 %v2340_v5  ;;  %1784 = vmatprep.subr.bf16.mxu1 %v2340_v5 }
  0x5b   : > { %1754 = vmatpush1.bf16.msra.mxu0 %v2356_v12  ;;  %1786 = vmatpush1.bf16.msra.mxu1 %v2356_v12 }
  0x5c   : > { %1756 = vmatprep.subr.bf16.mxu0 %v2360_v15  ;;  %1788 = vmatprep.subr.bf16.mxu1 %v2360_v15 }
  0x5f   : > { %1758 = vmatpush1.bf16.msra.mxu0 %v2376_v22  ;;  %1790 = vmatpush1.bf16.msra.mxu1 %v2376_v22 }
  0x60   : > { %1760 = vmatprep.subr.bf16.mxu0 %v2380_v25  ;;  %1792 = vmatprep.subr.bf16.mxu1 %v2380_v25 }
  0x63   : > { %1762 = vmatpush1.bf16.msra.mxu0 %v2393_v31  ;;  %1794 = vmatpush1.bf16.msra.mxu1 %v2393_v31 }
  0x64   : > { %1764 = vmatprep.subr.bf16.mxu0 %v2397_v35  ;;  %1796 = vmatprep.subr.bf16.mxu1 %v2397_v35 }
  0x67   : > { %1766 = vmatpush1.bf16.msra.mxu0 %v2402_v36  ;;  %1798 = vmatpush1.bf16.msra.mxu1 %v2402_v36 }
  0x68   : > { %1800 = vmatprep.subr.bf16.mxu0 %v2271_v34  ;;  %1832 = vmatprep.subr.bf16.mxu1 %v2271_v34 }
  0x6a   : > { %692 = vmatmul.mubr.f32.vlgmr.msra.gmra.mrb[4].mxu0 %v1648_v43  ;;  %823 = vmatmul.mubr.f32.vlgmr.msra.gmra.mrb[4].mxu1 %v1650_v44 }
  0x6b   : > { %1802 = vmatpush1.bf16.msra.mxu0 %v2282_v41  ;;  %1834 = vmatpush1.bf16.msra.mxu1 %v2282_v41 }
  0x6c   : > { %1804 = vmatprep.subr.bf16.mxu0 %v2284_v42  ;;  %697 = vmatprep.mubr.f32.mxu0 %v2129_v27 }
  0x6d   : > { %1836 = vmatprep.subr.bf16.mxu1 %v2284_v42  ;;  %828 = vmatprep.mubr.f32.mxu1 %v2129_v27 }
  0x6e   : > { %698 = vmatmul.mubr.f32.gmra.mrb[6].mxu0 %v1649_v45  ;;  %829 = vmatmul.mubr.f32.gmra.mrb[6].mxu1 %v1651_v47 }
  0x6f   : > { %1806 = vmatpush1.bf16.msra.mxu0 %v2296_v46  ;;  %1838 = vmatpush1.bf16.msra.mxu1 %v2296_v46 }
  0x70   : > { %1808 = vmatprep.subr.bf16.mxu0 %v2300_v49  ;;  %1840 = vmatprep.subr.bf16.mxu1 %v2300_v49 }
  0x71   : > { %951 = vmatprep.mubr.f32.mxu0 %v2129_v27  ;;  %1076 = vmatprep.mubr.f32.mxu1 %v2129_v27 }
  0x73   : > { %1810 = vmatpush1.bf16.msra.mxu0 %v2316_v56  ;;  %1842 = vmatpush1.bf16.msra.mxu1 %v2316_v56 }
  0x74   : > { %1812 = vmatprep.subr.bf16.mxu0 %v2320_v59  ;;  %1844 = vmatprep.subr.bf16.mxu1 %v2320_v59 }
  0x77   : > { %1814 = vmatpush1.bf16.msra.mxu0 %v2336_v2  ;;  %1846 = vmatpush1.bf16.msra.mxu1 %v2336_v2 }
  0x78   : > { %1816 = vmatprep.subr.bf16.mxu0 %v2340_v5  ;;  %1848 = vmatprep.subr.bf16.mxu1 %v2340_v5 }
  0x7b   : > { %1818 = vmatpush1.bf16.msra.mxu0 %v2356_v12  ;;  %1850 = vmatpush1.bf16.msra.mxu1 %v2356_v12 }
  0x7c   : > { %1820 = vmatprep.subr.bf16.mxu0 %v2360_v15  ;;  %1852 = vmatprep.subr.bf16.mxu1 %v2360_v15 }
  0x7f   : > { %1822 = vmatpush1.bf16.msra.mxu0 %v2376_v22  ;;  %1854 = vmatpush1.bf16.msra.mxu1 %v2376_v22 }
  0x80   : > { %1824 = vmatprep.subr.bf16.mxu0 %v2380_v25  ;;  %1856 = vmatprep.subr.bf16.mxu1 %v2380_v25 }
  0x83   : > { %1826 = vmatpush1.bf16.msra.mxu0 %v2393_v31  ;;  %1858 = vmatpush1.bf16.msra.mxu1 %v2393_v31 }
  0x84   : > { %1828 = vmatprep.subr.bf16.mxu0 %v2397_v35  ;;  %1860 = vmatprep.subr.bf16.mxu1 %v2397_v35 }
  0x87   : > { %1830 = vmatpush1.bf16.msra.mxu0 %v2402_v36  ;;  %1862 = vmatpush1.bf16.msra.mxu1 %v2402_v36 }
  0x88   : > { %1864 = vmatprep.subr.bf16.mxu0 %v2271_v34  ;;  %1896 = vmatprep.subr.bf16.mxu1 %v2271_v34 }
  0x8a   : > { %952 = vmatmul.mubr.f32.vlgmr.msra.gmra.mrb[8].mxu0 %v1652_v48  ;;  %1077 = vmatmul.mubr.f32.vlgmr.msra.gmra.mrb[8].mxu1 %v1654_v50 }
  0x8b   : > { %1866 = vmatpush1.bf16.msra.mxu0 %v2282_v41  ;;  %1898 = vmatpush1.bf16.msra.mxu1 %v2282_v41 }
  0x8c   : > { %1868 = vmatprep.subr.bf16.mxu0 %v2284_v42  ;;  %957 = vmatprep.mubr.f32.mxu0 %v2129_v27 }
  0x8d   : > { %1900 = vmatprep.subr.bf16.mxu1 %v2284_v42  ;;  %1082 = vmatprep.mubr.f32.mxu1 %v2129_v27 }
  0x8e   : > { %958 = vmatmul.mubr.f32.gmra.mrb[10].mxu0 %v1653_v51  ;;  %1083 = vmatmul.mubr.f32.gmra.mrb[10].mxu1 %v1655_v52 }
  0x8f   : > { %1870 = vmatpush1.bf16.msra.mxu0 %v2296_v46  ;;  %1902 = vmatpush1.bf16.msra.mxu1 %v2296_v46 }
  0x90   : > { %1872 = vmatprep.subr.bf16.mxu0 %v2300_v49  ;;  %1904 = vmatprep.subr.bf16.mxu1 %v2300_v49 }
  0x91   : > { %1205 = vmatprep.mubr.f32.mxu0 %v2129_v27  ;;  %1334 = vmatprep.mubr.f32.mxu1 %v2129_v27 }
  0x93   : > { %1874 = vmatpush1.bf16.msra.mxu0 %v2316_v56  ;;  %1906 = vmatpush1.bf16.msra.mxu1 %v2316_v56 }
  0x94   : > { %1876 = vmatprep.subr.bf16.mxu0 %v2320_v59  ;;  %1908 = vmatprep.subr.bf16.mxu1 %v2320_v59 }
  0x97   : > { %1878 = vmatpush1.bf16.msra.mxu0 %v2336_v2  ;;  %1910 = vmatpush1.bf16.msra.mxu1 %v2336_v2 }
  0x98   : > { %1880 = vmatprep.subr.bf16.mxu0 %v2340_v5  ;;  %1912 = vmatprep.subr.bf16.mxu1 %v2340_v5 }
  0x9b   : > { %1882 = vmatpush1.bf16.msra.mxu0 %v2356_v12  ;;  %1914 = vmatpush1.bf16.msra.mxu1 %v2356_v12 }
  0x9c   : > { %1884 = vmatprep.subr.bf16.mxu0 %v2360_v15  ;;  %1916 = vmatprep.subr.bf16.mxu1 %v2360_v15 }
  0x9f   : > { %1886 = vmatpush1.bf16.msra.mxu0 %v2376_v22  ;;  %1918 = vmatpush1.bf16.msra.mxu1 %v2376_v22 }
  0xa0   : > { %1888 = vmatprep.subr.bf16.mxu0 %v2380_v25  ;;  %1920 = vmatprep.subr.bf16.mxu1 %v2380_v25 }
  0xa3   : > { %1890 = vmatpush1.bf16.msra.mxu0 %v2393_v31  ;;  %1922 = vmatpush1.bf16.msra.mxu1 %v2393_v31 }
  0xa4   : > { %1892 = vmatprep.subr.bf16.mxu0 %v2397_v35  ;;  %1924 = vmatprep.subr.bf16.mxu1 %v2397_v35 }
  0xa7   : > { %1894 = vmatpush1.bf16.msra.mxu0 %v2402_v36  ;;  %1926 = vmatpush1.bf16.msra.mxu1 %v2402_v36 }
  0xa8   : > { %1928 = vmatprep.subr.bf16.mxu0 %v2271_v34  ;;  %1959 = vmatprep.subr.bf16.mxu1 %v2271_v34  ;;  %v1661_v34 = vld [vmem:[%s2408_s24 + $0x88] sm:$0xff] }
  0xaa   : > { %1206 = vmatmul.mubr.f32.vlgmr.msra.gmra.mrb[12].mxu0 %v1656_v53  ;;  %1335 = vmatmul.mubr.f32.vlgmr.msra.gmra.mrb[12].mxu1 %v1658_v54 }
  0xab   : > { %1930 = vmatpush1.bf16.msra.mxu0 %v2282_v41  ;;  %1967 = vmatpush1.bf16.msra.mxu1 %v2282_v41 }
  0xac   : > { %1932 = vmatprep.subr.bf16.mxu0 %v2284_v42  ;;  %1211 = vmatprep.mubr.f32.mxu0 %v2129_v27 }
  0xad   : > { %1960 = vmatprep.subr.bf16.mxu1 %v2284_v42  ;;  %1340 = vmatprep.mubr.f32.mxu1 %v2129_v27 }
  0xae   : > { %1212 = vmatmul.mubr.f32.gmra.mrb[14].mxu0 %v1657_v55  ;;  %1341 = vmatmul.mubr.f32.gmra.mrb[14].mxu1 %v1659_v57 }
  0xaf   : > { %1934 = vmatpush1.bf16.msra.mxu0 %v2296_v46  ;;  %1968 = vmatpush1.bf16.msra.mxu1 %v2296_v46 }
  0xb0   : > { %1936 = vmatprep.subr.bf16.mxu0 %v2300_v49  ;;  %1961 = vmatprep.subr.bf16.mxu1 %v2300_v49 }
  0xb1   : > { %1459 = vmatprep.mubr.f32.mxu0 %v2129_v27  ;;  %1465 = vmatprep.mubr.f32.mxu1 %v2129_v27  ;;  %v1660_v27 = vld [vmem:[%s2408_s24 + $0x80] sm:$0xff]  ;;  %s2049_s24 = scalar_lea.vmem %s2754_s8, 512 }
  0xb2   : > { %p2050_p0 = scmp.ne.s32.totalorder %s2754_s8, %s2049_s24 }
  0xb3   : > { %1938 = vmatpush1.bf16.msra.mxu0 %v2316_v56  ;;  %1969 = vmatpush1.bf16.msra.mxu1 %v2316_v56 }
  0xb4   : > { %1940 = vmatprep.subr.bf16.mxu0 %v2320_v59  ;;  %1962 = vmatprep.subr.bf16.mxu1 %v2320_v59  ;;  %p2051_p1 = pnand %p2050_p0, %p2197_p5 }
  0xb6   : > { %p2052_p2 = pneg %p2051_p1 }
  0xb7   : > { %1942 = vmatpush1.bf16.msra.mxu0 %v2336_v2  ;;  %1970 = vmatpush1.bf16.msra.mxu1 %v2336_v2 }
  0xb8   : > { %1944 = vmatprep.subr.bf16.mxu0 %v2340_v5  ;;  %1963 = vmatprep.subr.bf16.mxu1 %v2340_v5 }
  0xbb   : > { %1946 = vmatpush1.bf16.msra.mxu0 %v2356_v12  ;;  %1971 = vmatpush1.bf16.msra.mxu1 %v2356_v12 }
  0xbc   : > { %1948 = vmatprep.subr.bf16.mxu0 %v2360_v15  ;;  %1964 = vmatprep.subr.bf16.mxu1 %v2360_v15 }
  0xbf   : > { %1950 = vmatpush1.bf16.msra.mxu0 %v2376_v22  ;;  %1972 = vmatpush1.bf16.msra.mxu1 %v2376_v22 }
  0xc0   : > { %1952 = vmatprep.subr.bf16.mxu0 %v2380_v25  ;;  %1965 = vmatprep.subr.bf16.mxu1 %v2380_v25 }
  0xc3   : > { %1954 = vmatpush1.bf16.msra.mxu0 %v2393_v31  ;;  %1973 = vmatpush1.bf16.msra.mxu1 %v2393_v31 }
  0xc4   : > { %1956 = vmatprep.subr.bf16.mxu0 %v2397_v35  ;;  %1966 = vmatprep.subr.bf16.mxu1 %v2397_v35 }
  0xc7   : > { %1958 = vmatpush1.bf16.msra.mxu0 %v2402_v36  ;;  %1974 = vmatpush1.bf16.msra.mxu1 %v2402_v36 }
  0xca   : > { %1460 = vmatmul.mubr.f32.vlgmr.msra.gmra.mrb[16].mxu0 %v1660_v27  ;;  %1466 = vmatmul.mubr.f32.vlgmr.msra.gmra.mrb[16].mxu1 %v1661_v34 }
 0x11d   : > { %v454_v41 = vpop.f32.mrb[0].mxu0  ;;  %v568_v42 = vpop.f32.mrb[0].mxu1 }
 0x11e   : > { %583 = vrot.lane.b32.xlu0 %v568_v42, %s2130_s25  ;;  %v456_v46 = vpop.f32.mrb[1].mxu0  ;;  %v570_v49 = vpop.f32.mrb[1].mxu1 }
 0x11f   : > { %471 = vrot.lane.b32.xlu1 %v456_v46, %s2130_s25 }
 0x121   : > { %v574_v56 = vpop.f32.mrb[2].mxu1  ;;  %v460_v58 = vpop.f32.mrb[2].mxu0 }
 0x122   : > { %469 = vrot.lane.b32.xlu0 %v454_v41, %s2130_s25  ;;  %v576_v59 = vpop.f32.mrb[3].mxu1  ;;  %v462_v60 = vpop.f32.mrb[3].mxu0 }
 0x123   : > { %587 = vrot.lane.b32.xlu1 %v574_v56, %s2130_s25 }
 0x126   : > { %585 = vrot.lane.b32.xlu0 %v570_v49, %s2130_s25 }
 0x127   : > { %589 = vrot.lane.b32.xlu1 %v576_v59, %s2130_s25 }
 0x12a   : > { %473 = vrot.lane.b32.xlu0 %v460_v58, %s2130_s25 }
 0x12b   : > { %475 = vrot.lane.b32.xlu1 %v462_v60, %s2130_s25 }
 0x13d   : > { %v693_v61 = vpop.f32.mrb[4].mxu0  ;;  %v824_v62 = vpop.f32.mrb[4].mxu1 }
 0x13e   : > { %v695_v63 = vpop.f32.mrb[5].mxu0  ;;  %708 = vrot.lane.b32.xlu0 %v693_v61, %s2130_s25  ;;  %v826_v0 = vpop.f32.mrb[5].mxu1 }
 0x13f   : > { %710 = vrot.lane.b32.xlu1 %v695_v63, %s2130_s25 }
 0x141   : > { %v699_v1 = vpop.f32.mrb[6].mxu0  ;;  %v830_v2 = vpop.f32.mrb[6].mxu1 }
 0x142   : > { %839 = vrot.lane.b32.xlu0 %v824_v62, %s2130_s25  ;;  %v701_v3 = vpop.f32.mrb[7].mxu0  ;;  %v832_v4 = vpop.f32.mrb[7].mxu1 }
 0x143   : > { %841 = vrot.lane.b32.xlu1 %v826_v0, %s2130_s25 }
 0x146   : > { %712 = vrot.lane.b32.xlu0 %v699_v1, %s2130_s25 }
 0x147   : > { %714 = vrot.lane.b32.xlu1 %v701_v3, %s2130_s25 }
 0x14a   : > { %843 = vrot.lane.b32.xlu0 %v830_v2, %s2130_s25 }
 0x14b   : > { %845 = vrot.lane.b32.xlu1 %v832_v4, %s2130_s25 }
 0x15d   : > { %v953_v5 = vpop.f32.mrb[8].mxu0  ;;  %v1078_v6 = vpop.f32.mrb[8].mxu1 }
 0x15e   : > { %v955_v7 = vpop.f32.mrb[9].mxu0  ;;  %968 = vrot.lane.b32.xlu0 %v953_v5, %s2130_s25  ;;  %v1080_v8 = vpop.f32.mrb[9].mxu1 }
 0x15f   : > { %970 = vrot.lane.b32.xlu1 %v955_v7, %s2130_s25 }
 0x161   : > { %v959_v9 = vpop.f32.mrb[10].mxu0  ;;  %v1084_v10 = vpop.f32.mrb[10].mxu1 }
 0x162   : > { %1093 = vrot.lane.b32.xlu0 %v1078_v6, %s2130_s25  ;;  %v961_v11 = vpop.f32.mrb[11].mxu0  ;;  %v1086_v12 = vpop.f32.mrb[11].mxu1 }
 0x163   : > { %1095 = vrot.lane.b32.xlu1 %v1080_v8, %s2130_s25 }
 0x166   : > { %972 = vrot.lane.b32.xlu0 %v959_v9, %s2130_s25 }
 0x167   : > { %974 = vrot.lane.b32.xlu1 %v961_v11, %s2130_s25  ;;  %v345_v11 = vlaneseq }
 0x16a   : > { %1097 = vrot.lane.b32.xlu0 %v1084_v10, %s2130_s25 }
 0x16b   : > { %1099 = vrot.lane.b32.xlu1 %v1086_v12, %s2130_s25 }
 0x17d   : > { %v1207_v13 = vpop.f32.mrb[12].mxu0  ;;  %v1336_v14 = vpop.f32.mrb[12].mxu1 }
 0x17e   : > { %v1209_v15 = vpop.f32.mrb[13].mxu0  ;;  %1222 = vrot.lane.b32.xlu0 %v1207_v13, %s2130_s25  ;;  %v1338_v16 = vpop.f32.mrb[13].mxu1 }
 0x17f   : > { %1224 = vrot.lane.b32.xlu1 %v1209_v15, %s2130_s25 }
 0x181   : > { %v1213_v17 = vpop.f32.mrb[14].mxu0  ;;  %v1342_v18 = vpop.f32.mrb[14].mxu1 }
 0x182   : > { %1351 = vrot.lane.b32.xlu0 %v1336_v14, %s2130_s25  ;;  %v1215_v19 = vpop.f32.mrb[15].mxu0  ;;  %v1344_v20 = vpop.f32.mrb[15].mxu1 }
 0x183   : > { %1353 = vrot.lane.b32.xlu1 %v1338_v16, %s2130_s25 }
 0x186   : > { %1226 = vrot.lane.b32.xlu0 %v1213_v17, %s2130_s25  ;;  %v346_v17 = vand.u32 127, %v345_v11 }
 0x187   : > { %1228 = vrot.lane.b32.xlu1 %v1215_v19, %s2130_s25 }
 0x188   : > { %v347_v19 = vadd.s32 128, %v346_v17 }
 0x18a   : > { %1355 = vrot.lane.b32.xlu0 %v1342_v18, %s2130_s25 }
 0x18b   : > { %1357 = vrot.lane.b32.xlu1 %v1344_v20, %s2130_s25 }
 0x190   : > { %v584_v21 = vpop.permute.xlu0 %583 }
 0x191   : > { %v472_v22 = vpop.permute.xlu1 %471  ;;  %v597_v23 = vsel %vm477_vm0, 0.0, %v584_v21 }
 0x192   : > { %605 = vrot.lane.b32.xlu0 %v597_v23, %s2131_s26 }
 0x194   : > { %v2605_v24 = vpop.permute.xlu0 %469 }
 0x195   : > { %v2609_v25 = vsel %vm477_vm0, %v2605_v24, %v472_v22  ;;  %v588_v26 = vpop.permute.xlu1 %587  ;;  %v2653_v22 = vmul.u32.u64.low 2454267026, %v346_v17  ;;  %v2654_v23 = vmul.u32.u64.high 2454267026, %v346_v17, %v2653_v22 }
 0x196   : > { %v598_v43 = vsel %vm477_vm0, 0.0, %v588_v26 }
 0x197   : > { %vm354_vm3 = vc.u32 %v2653_v22, 2454267026 }
 0x198   : > { %v586_v28 = vpop.permute.xlu0 %585 }
 0x199   : > { %v591_v29 = vsel %vm477_vm0, %v584_v21, %v586_v28  ;;  %v590_v31 = vpop.permute.xlu1 %589  ;;  %v2650_v20 = vmul.u32.u64.low 2454267026, %v347_v19  ;;  %v2651_v21 = vmul.u32.u64.high 2454267026, %v347_v19, %v2650_v20 }
 0x19a   : > { %v599_v30 = vsel %vm486_vm1, %v591_v29, 0.0  ;;  %v592_v40 = vsel %vm477_vm0, %v588_v26, %v590_v31  ;;  %v2136_v26 = vmov 0  }
 0x19b   : > { %607 = vrot.lane.b32.xlu1 %v599_v30, %s2131_s26  ;;  %v600_v44 = vsel %vm486_vm1, %v592_v40, 0.0  ;;  %vm368_vm2 = vc.u32 %v2650_v20, 2454267026  ;;  %v355_v29 = vsel %vm354_vm3, 1, %v2136_v26  ;;  %vm1252_vm3 = vcmask 818176  }
 0x19c   : > { %v2613_v32 = vpop.permute.xlu0 %473  ;;  %v369_v28 = vsel %vm368_vm2, 1, %v2136_v26 }
 0x19d   : > { %v1461_v33 = vpop.f32.mrb[16].mxu0  ;;  %v1467_v35 = vpop.f32.mrb[16].mxu1 }
 0x19e   : > { %1476 = vrot.lane.b32.xlu0 %v1461_v33, %s2130_s25  ;;  %v1463_v36 = vpop.f32.mrb[17].mxu0  ;;  %v1469_v37 = vpop.f32.mrb[17].mxu1 }
 0x19f   : > { %1478 = vrot.lane.b32.xlu1 %v1463_v36, %s2130_s25  ;;  %v476_v38 = vpop.permute.xlu1 %475  ;;  %v356_v36 = vadd.s32 %v2654_v23, %v355_v29 }
 0x1a0   : > { %v2619_v39 = vsel %vm477_vm0, %v2613_v32, %v476_v38 }
 0x1a2   : > { %1480 = vrot.lane.b32.xlu0 %v1467_v35, %s2130_s25  ;;  %v370_v35 = vadd.s32 %v2651_v21, %v369_v28 }
 0x1a3   : > { %1482 = vrot.lane.b32.xlu1 %v1469_v37, %s2130_s25  ;;  %s2140_s25 = smov [#allocation3]  }
 0x1a6   : > { %609 = vrot.lane.b32.xlu0 %v598_v43, %s2131_s26 }
 0x1a7   : > { %611 = vrot.lane.b32.xlu1 %v600_v44, %s2131_s26  ;;  %s2053_s26 = sshll.u32 %s2140_s25, 4  ;;  %s2054_s26 = int_to_ptr.vmem [resolvable:$false] %s2053_s26 }
 0x1a8   : > { %p2056_p3 = scmp.lt.s32.totalorder %s2754_s8, %s2054_s26 }
 0x1b0   : > { %v709_v45 = vpop.permute.xlu0 %708 }
 0x1b1   : > { %v711_v47 = vpop.permute.xlu1 %710  ;;  %v722_v48 = vsel %vm477_vm0, 0.0, %v709_v45 }
 0x1b2   : > { %v716_v50 = vsel %vm477_vm0, %v709_v45, %v711_v47  ;;  %732 = vrot.lane.b32.xlu0 %v722_v48, %s2132_s27  ;;  %v371_v45 = vshrl.u32 %v370_v35, 3  ;;  %v357_v47 = vshrl.u32 %v356_v36, 3 }
 0x1b3   : > { %v724_v51 = vsel %vm486_vm1, %v716_v50, 0.0 }
 0x1b4   : > { %734 = vrot.lane.b32.xlu1 %v724_v51, %s2132_s27  ;;  %v840_v52 = vpop.permute.xlu0 %839 }
 0x1b5   : > { %v842_v53 = vpop.permute.xlu1 %841  ;;  %v853_v54 = vsel %vm477_vm0, 0.0, %v840_v52 }
 0x1b6   : > { %v847_v55 = vsel %vm477_vm0, %v840_v52, %v842_v53  ;;  %861 = vrot.lane.b32.xlu0 %v853_v54, %s2133_s28  ;;  %v372_v54 = vmul.u32 14, %v371_v45 }
 0x1b7   : > { %v855_v57 = vsel %vm486_vm1, %v847_v55, 0.0  ;;  %v358_v55 = vmul.u32 14, %v357_v47  ;;  %v488_v47 = vsel %vm486_vm1, %v2619_v39, 0.0 }
 0x1b8   : > { %863 = vrot.lane.b32.xlu1 %v855_v57, %s2133_s28  ;;  %v713_v27 = vpop.permute.xlu0 %712 }
 0x1b9   : > { %v715_v34 = vpop.permute.xlu1 %714  ;;  %v723_v41 = vsel %vm477_vm0, 0.0, %v713_v27 }
 0x1ba   : > { %v717_v42 = vsel %vm477_vm0, %v713_v27, %v715_v34  ;;  %736 = vrot.lane.b32.xlu0 %v723_v41, %s2132_s27 }
 0x1bb   : > { %v725_v46 = vsel %vm486_vm1, %v717_v42, 0.0 }
 0x1bc   : > { %738 = vrot.lane.b32.xlu1 %v725_v46, %s2132_s27  ;;  %v844_v49 = vpop.permute.xlu0 %843  ;;  %v373_v46 = vsub.s32 %v347_v19, %v372_v54  ;;  %s2055_s27 = scalar_lea.vmem %s2054_s26, 1024 }
 0x1bd   : > { %v846_v56 = vpop.permute.xlu1 %845  ;;  %v854_v58 = vsel %vm477_vm0, 0.0, %v844_v49  ;;  %p2057_p4 = scmp.lt.s32.totalorder %s2055_s27, %s2049_s24 }
 0x1be   : > { %v848_v59 = vsel %vm477_vm0, %v844_v49, %v846_v56  ;;  %865 = vrot.lane.b32.xlu0 %v854_v58, %s2133_s28  ;;  %v359_v49 = vsub.s32 %v346_v17, %v358_v55  ;;  %vm377_vm4 = vcmp.ne.s32.totalorder %v373_v46, 0  ;;  %vm379_vm5 = vcmp.lt.s32.totalorder %v373_v46, 0 }
 0x1bf   : > { %v856_v60 = vsel %vm486_vm1, %v848_v59, 0.0  ;;  %v383_v59 = vadd.s32 14, %v373_v46  ;;  %vm381_vm8 = vmand %vm379_vm5, %vm377_vm4  ;;  %vm1381_vm4 = vcmask 809984   ;;  %vm1506_vm5 = vcmask 801792   ;;  %p2058_p6 = por %p2057_p4, %p2056_p3 }
 0x1c0   : > { %867 = vrot.lane.b32.xlu1 %v856_v60, %s2133_s28  ;;  %vm376_vm6 = vcmp.ne.s32.totalorder %v359_v49, 0  ;;  %vm378_vm7 = vcmp.lt.s32.totalorder %v359_v49, 0  ;;  %v382_v60 = vadd.s32 14, %v359_v49 }
 0x1c1   : > { %vm380_vm9 = vmand %vm378_vm7, %vm376_vm6  ;;  %vm1522_vm6 = vcmask 556032   ;;  %p2059_p7 = pnand %p2058_p6, %p2052_p2 }
 0x1d0   : > { %v969_v61 = vpop.permute.xlu0 %968 }
 0x1d1   : > { %v971_v62 = vpop.permute.xlu1 %970  ;;  %v982_v63 = vsel %vm477_vm0, 0.0, %v969_v61 }
 0x1d2   : > { %v976_v0 = vsel %vm477_vm0, %v969_v61, %v971_v62  ;;  %990 = vrot.lane.b32.xlu0 %v982_v63, %s2134_s29  ;;  %v2670_v61 = vsel %vm381_vm8, %v383_v59, %v373_v46  ;;  %v2672_v62 = vsel %vm380_vm9, %v382_v60, %v359_v49  ;;  %v487_v63 = vsel %vm486_vm1, %v2609_v25, 0.0 }
 0x1d3   : > { %v984_v1 = vsel %vm486_vm1, %v976_v0, 0.0  ;;  %vm490_vm10 = vcmp.ge.s32.totalorder %v2670_v61, 1  ;;  %vm489_vm11 = vcmp.ge.s32.totalorder %v2672_v62, 1  ;;  %v484_v0 = vsel %vm477_vm0, 0.0, %v2605_v24 }
 0x1d4   : > { %992 = vrot.lane.b32.xlu1 %v984_v1, %s2134_s29  ;;  %v1094_v2 = vpop.permute.xlu0 %1093  ;;  %vm727_vm14 = vcmp.le.s32.totalorder %v2670_v61, 12  ;;  %vm726_vm2 = vcmp.le.s32.totalorder %v2672_v62, 12 }
 0x1d5   : > { %v1096_v3 = vpop.permute.xlu1 %1095  ;;  %v1107_v4 = vsel %vm477_vm0, 0.0, %v1094_v2 }
 0x1d6   : > { %v1101_v5 = vsel %vm477_vm0, %v1094_v2, %v1096_v3  ;;  %1115 = vrot.lane.b32.xlu0 %v1107_v4, %s2135_s30  ;;  %v492_v2 = vsel %vm490_vm10, %v487_v63, 0.0  ;;  %v491_v4 = vsel %vm489_vm11, %v484_v0, 0.0 }
 0x1d7   : > { %v1109_v6 = vsel %vm486_vm1, %v1101_v5, 0.0 }
 0x1d8   : > { %1117 = vrot.lane.b32.xlu1 %v1109_v6, %s2135_s30  ;;  %v973_v7 = vpop.permute.xlu0 %972 }
 0x1d9   : > { %v975_v8 = vpop.permute.xlu1 %974  ;;  %v983_v9 = vsel %vm477_vm0, 0.0, %v973_v7 }
 0x1da   : > { %v977_v10 = vsel %vm477_vm0, %v973_v7, %v975_v8  ;;  %994 = vrot.lane.b32.xlu0 %v983_v9, %s2134_s29 }
 0x1db   : > { %v985_v12 = vsel %vm486_vm1, %v977_v10, 0.0 }
 0x1dc   : > { %996 = vrot.lane.b32.xlu1 %v985_v12, %s2134_s29  ;;  %v1098_v13 = vpop.permute.xlu0 %1097 }
 0x1dd   : > { %v1100_v14 = vpop.permute.xlu1 %1099  ;;  %v1108_v15 = vsel %vm477_vm0, 0.0, %v1098_v13 }
 0x1de   : > { %v1102_v16 = vsel %vm477_vm0, %v1098_v13, %v1100_v14  ;;  %1119 = vrot.lane.b32.xlu0 %v1108_v15, %s2135_s30 }
 0x1df   : > { %v1110_v18 = vsel %vm486_vm1, %v1102_v16, 0.0 }
 0x1e0   : > { %1121 = vrot.lane.b32.xlu1 %v1110_v18, %s2135_s30 }
 0x1f0   : > { %v1223_v30 = vpop.permute.xlu0 %1222 }
 0x1f1   : > { %v1225_v31 = vpop.permute.xlu1 %1224  ;;  %v1236_v33 = vsel %vm477_vm0, 0.0, %v1223_v30 }
 0x1f2   : > { %v1230_v37 = vsel %vm477_vm0, %v1223_v30, %v1225_v31  ;;  %1244 = vrot.lane.b32.xlu0 %v1236_v33, %s2137_s3 }
 0x1f3   : > { %v1238_v38 = vsel %vm486_vm1, %v1230_v37, 0.0 }
 0x1f4   : > { %1246 = vrot.lane.b32.xlu1 %v1238_v38, %s2137_s3  ;;  %v1352_v40 = vpop.permute.xlu0 %1351 }
 0x1f5   : > { %v1354_v43 = vpop.permute.xlu1 %1353  ;;  %v1365_v44 = vsel %vm477_vm0, 0.0, %v1352_v40 }
 0x1f6   : > { %v1359_v48 = vsel %vm477_vm0, %v1352_v40, %v1354_v43  ;;  %1373 = vrot.lane.b32.xlu0 %v1365_v44, %s2138_s4  ;;  %v485_v44 = vsel %vm477_vm0, 0.0, %v2613_v32 }
 0x1f7   : > { %v1367_v50 = vsel %vm486_vm1, %v1359_v48, 0.0 }
 0x1f8   : > { %1375 = vrot.lane.b32.xlu1 %v1367_v50, %s2138_s4  ;;  %v1227_v51 = vpop.permute.xlu0 %1226 }
 0x1f9   : > { %v1229_v52 = vpop.permute.xlu1 %1228  ;;  %v1237_v53 = vsel %vm477_vm0, 0.0, %v1227_v51 }
 0x1fa   : > { %v1231_v57 = vsel %vm477_vm0, %v1227_v51, %v1229_v52  ;;  %1248 = vrot.lane.b32.xlu0 %v1237_v53, %s2137_s3  ;;  %v493_v51 = vsel %vm489_vm11, %v485_v44, 0.0  ;;  %v494_v53 = vsel %vm490_vm10, %v488_v47, 0.0 }
 0x1fb   : > { %v1239_v27 = vsel %vm486_vm1, %v1231_v57, 0.0 }
 0x1fc   : > { %1250 = vrot.lane.b32.xlu1 %v1239_v27, %s2137_s3  ;;  %v1356_v34 = vpop.permute.xlu0 %1355 }
 0x1fd   : > { %v1358_v41 = vpop.permute.xlu1 %1357  ;;  %v1366_v42 = vsel %vm477_vm0, 0.0, %v1356_v34 }
 0x1fe   : > { %v1360_v56 = vsel %vm477_vm0, %v1356_v34, %v1358_v41  ;;  %1377 = vrot.lane.b32.xlu0 %v1366_v42, %s2138_s4 }
 0x1ff   : > { %v1368_v58 = vsel %vm486_vm1, %v1360_v56, 0.0 }
 0x200   : > { %1379 = vrot.lane.b32.xlu1 %v1368_v58, %s2138_s4 }
 0x204   : > { %v606_v1 = vpop.permute.xlu0 %605 }
 0x20d   : > { %v608_v3 = vpop.permute.xlu1 %607 }
 0x20e   : > { %v614_v5 = vsel %vm613_vm12, %v606_v1, %v608_v3  ;;  %v621_v6 = vadd.f32 %v608_v3, %v492_v2 }
 0x20f   : > { %v620_v25 = vadd.f32 %v614_v5, %v491_v4 }
 0x210   : > { %v1477_v7 = vpop.permute.xlu0 %1476 }
 0x211   : > { %v1479_v8 = vpop.permute.xlu1 %1478  ;;  %v1490_v9 = vsel %vm477_vm0, 0.0, %v1477_v7 }
 0x212   : > { %v1484_v10 = vsel %vm477_vm0, %v1477_v7, %v1479_v8  ;;  %1498 = vrot.lane.b32.xlu0 %v1490_v9, %s2139_s5 }
 0x213   : > { %v1492_v24 = vsel %vm486_vm1, %v1484_v10, 0.0 }
 0x214   : > { %v1481_v11 = vpop.permute.xlu0 %1480  ;;  %1500 = vrot.lane.b32.xlu1 %v1492_v24, %s2139_s5 }
 0x215   : > { %v1483_v12 = vpop.permute.xlu1 %1482  ;;  %v1491_v13 = vsel %vm477_vm0, 0.0, %v1481_v11 }
 0x216   : > { %v1485_v14 = vsel %vm477_vm0, %v1481_v11, %v1483_v12  ;;  %1502 = vrot.lane.b32.xlu0 %v1491_v13, %s2139_s5  ;;  %vm998_vm0 = vcmask 924672  }
 0x217   : > { %v1493_v15 = vsel %vm486_vm1, %v1485_v14, 0.0  ;;  %vm1123_vm1 = vcmask 916480  }
 0x218   : > { %1504 = vrot.lane.b32.xlu1 %v1493_v15, %s2139_s5  ;;  %v610_v16 = vpop.permute.xlu0 %609 }
 0x219   : > { %v612_v17 = vpop.permute.xlu1 %611 }
 0x21a   : > { %v615_v39 = vsel %vm613_vm12, %v610_v16, %v612_v17  ;;  %v623_v27 = vadd.f32 %v612_v17, %v494_v53 }
 0x21b   : > { %v622_v59 = vadd.f32 %v615_v39, %v493_v51 }
 0x224   : > { %v733_v18 = vpop.permute.xlu0 %732 }
 0x226   : > { %v735_v19 = vpop.permute.xlu1 %734 }
 0x227   : > { %v741_v48 = vsel %vm740_vm13, %v733_v18, %v735_v19  ;;  %v748_v52 = vsel %vm727_vm14, %v735_v19, 0.0 }
 0x228   : > { %v862_v20 = vpop.permute.xlu0 %861  ;;  %v747_v54 = vsel %vm726_vm2, %v741_v48, 0.0  ;;  %v752_v34 = vadd.f32 %v748_v52, %v621_v6 }
 0x229   : > { %v751_v46 = vadd.f32 %v747_v54, %v620_v25 }
 0x22a   : > { %v864_v21 = vpop.permute.xlu1 %863 }
 0x22b   : > { %v870_v32 = vsel %vm869_vm15, %v862_v20, %v864_v21  ;;  %v877_v55 = vsel %vm490_vm10, %v864_v21, 0.0 }
 0x22c   : > { %v737_v22 = vpop.permute.xlu0 %736  ;;  %v876_v41 = vsel %vm489_vm11, %v870_v32, 0.0  ;;  %v881_v60 = vadd.f32 %v877_v55, %v752_v34 }
 0x22d   : > { %v880_v2 = vadd.f32 %v876_v41, %v751_v46 }
 0x22e   : > { %v739_v23 = vpop.permute.xlu1 %738 }
 0x22f   : > { %v742_v57 = vsel %vm740_vm13, %v737_v22, %v739_v23  ;;  %v750_v49 = vsel %vm727_vm14, %v739_v23, 0.0 }
 0x230   : > { %v866_v26 = vpop.permute.xlu0 %865  ;;  %v749_v63 = vsel %vm726_vm2, %v742_v57, 0.0  ;;  %v754_v6 = vadd.f32 %v750_v49, %v623_v27 }
 0x231   : > { %v753_v9 = vadd.f32 %v749_v63, %v622_v59 }
 0x232   : > { %v868_v28 = vpop.permute.xlu1 %867 }
 0x233   : > { %v871_v56 = vsel %vm869_vm15, %v866_v26, %v868_v28  ;;  %v879_v3 = vsel %vm490_vm10, %v868_v28, 0.0 }
 0x234   : > { %v878_v25 = vsel %vm489_vm11, %v871_v56, 0.0  ;;  %v883_v12 = vadd.f32 %v879_v3, %v754_v6 }
 0x235   : > { %v882_v17 = vadd.f32 %v878_v25, %v753_v9 }
 0x244   : > { %v991_v29 = vpop.permute.xlu0 %990 }
 0x246   : > { %v993_v30 = vpop.permute.xlu1 %992 }
 0x247   : > { %v999_v0 = vsel %vm998_vm0, %v991_v29, %v993_v30  ;;  %v1006_v7 = vadd.f32 %v993_v30, %v881_v60 }
 0x248   : > { %v1116_v31 = vpop.permute.xlu0 %1115  ;;  %v1005_v10 = vadd.f32 %v999_v0, %v880_v2 }
 0x24a   : > { %v1118_v33 = vpop.permute.xlu1 %1117 }
 0x24b   : > { %v1124_v58 = vsel %vm1123_vm1, %v1116_v31, %v1118_v33  ;;  %v1131_v4 = vsel %vm727_vm14, %v1118_v33, 0.0 }
 0x24c   : > { %v995_v35 = vpop.permute.xlu0 %994  ;;  %v1130_v8 = vsel %vm726_vm2, %v1124_v58, 0.0  ;;  %v1135_v13 = vadd.f32 %v1131_v4, %v1006_v7 }
 0x24d   : > { %v1134_v18 = vadd.f32 %v1130_v8, %v1005_v10 }
 0x24e   : > { %v997_v36 = vpop.permute.xlu1 %996 }
 0x24f   : > { %v1000_v14 = vsel %vm998_vm0, %v995_v35, %v997_v36  ;;  %v1008_v21 = vadd.f32 %v997_v36, %v883_v12 }
 0x250   : > { %v1120_v37 = vpop.permute.xlu0 %1119  ;;  %v1007_v28 = vadd.f32 %v1000_v14, %v882_v17 }
 0x252   : > { %v1122_v38 = vpop.permute.xlu1 %1121 }
 0x253   : > { %v1125_v24 = vsel %vm1123_vm1, %v1120_v37, %v1122_v38  ;;  %v1133_v19 = vsel %vm727_vm14, %v1122_v38, 0.0 }
 0x254   : > { %v1132_v22 = vsel %vm726_vm2, %v1125_v24, 0.0  ;;  %v1137_v31 = vadd.f32 %v1133_v19, %v1008_v21 }
 0x255   : > { %v1136_v36 = vadd.f32 %v1132_v22, %v1007_v28 }
 0x264   : > { %v1245_v40 = vpop.permute.xlu0 %1244 }
 0x266   : > { %v1247_v43 = vpop.permute.xlu1 %1246 }
 0x267   : > { %v1253_v5 = vsel %vm1252_vm3, %v1245_v40, %v1247_v43  ;;  %v1260_v11 = vsel %vm490_vm10, %v1247_v43, 0.0 }
 0x268   : > { %v1374_v45 = vpop.permute.xlu0 %1373  ;;  %v1259_v15 = vsel %vm489_vm11, %v1253_v5, 0.0  ;;  %v1264_v23 = vadd.f32 %v1260_v11, %v1135_v13 }
 0x269   : > { %v1263_v29 = vadd.f32 %v1259_v15, %v1134_v18 }
 0x26a   : > { %v1376_v50 = vpop.permute.xlu1 %1375 }
 0x26b   : > { %v1382_v33 = vsel %vm1381_vm4, %v1374_v45, %v1376_v50  ;;  %v1389_v38 = vadd.f32 %v1376_v50, %v1264_v23 }
 0x26c   : > { %v1249_v42 = vpop.permute.xlu0 %1248  ;;  %v1388_v44 = vadd.f32 %v1382_v33, %v1263_v29 }
 0x26e   : > { %v1251_v1 = vpop.permute.xlu1 %1250 }
 0x26f   : > { %v1254_v20 = vsel %vm1252_vm3, %v1249_v42, %v1251_v1  ;;  %v1262_v30 = vsel %vm490_vm10, %v1251_v1, 0.0 }
 0x270   : > { %v1378_v16 = vpop.permute.xlu0 %1377  ;;  %v1261_v35 = vsel %vm489_vm11, %v1254_v20, 0.0  ;;  %v1266_v40 = vadd.f32 %v1262_v30, %v1137_v31 }
 0x271   : > { %v1265_v47 = vadd.f32 %v1261_v35, %v1136_v36 }
 0x272   : > { %v1380_v26 = vpop.permute.xlu1 %1379 }
 0x273   : > { %v1383_v45 = vsel %vm1381_vm4, %v1378_v16, %v1380_v26  ;;  %v1391_v50 = vadd.f32 %v1380_v26, %v1266_v40 }
 0x274   : > { %v1390_v55 = vadd.f32 %v1383_v45, %v1265_v47 }
 0x284   : > { %v1499_v37 = vpop.permute.xlu0 %1498 }
 0x286   : > { %v1501_v43 = vpop.permute.xlu1 %1500 }
 0x287   : > { %v1507_v48 = vsel %vm1506_vm5, %v1499_v37, %v1501_v43  ;;  %v1514_v51 = vsel %vm727_vm14, %v1501_v43, 0.0 }
 0x288   : > { %v1513_v52 = vsel %vm726_vm2, %v1507_v48, 0.0  ;;  %v1518_v32 = vadd.f32 %v1514_v51, %v1389_v38  ;;  %v1503_v54 = vpop.permute.xlu0 %1502 }
 0x289   : > { %v1517_v53 = vadd.f32 %v1513_v52, %v1388_v44 }
 0x28a   : > { %1523 = vst.msk [vmem:[%s273_s7 + $0x8] sm:$0xff] %vm1522_vm6, %v1518_v32  ;;  %v1505_v39 = vpop.permute.xlu1 %1504 }
 0x28b   : > { %1521 = vst [vmem:[%s273_s7] sm:$0xff] %v1517_v53  ;;  %v1508_v57 = vsel %vm1506_vm5, %v1503_v54, %v1505_v39  ;;  %v1516_v27 = vsel %vm727_vm14, %v1505_v39, 0.0 }
 0x28c   : > { %v1515_v34 = vsel %vm726_vm2, %v1508_v57, 0.0  ;;  %v1520_v41 = vadd.f32 %v1516_v27, %v1391_v50 }
 0x28d   : > { %v1519_v42 = vadd.f32 %v1515_v34, %v1390_v55 }
 0x28e   : > { %1525 = vst.msk [vmem:[%s273_s7 + $0x18] sm:$0xff] %vm1522_vm6, %v1520_v41 }
 0x28f   : > { %1524 = vst [vmem:[%s273_s7 + $0x10] sm:$0xff] %v1519_v42 }
 0x290   : > { %2062 = shalt.err (!%p2059_p7)
}
 0x291   : > { %s2063_s28 = scalar_lea.hbm %s2764_s18, 512  ;;  %s2067_s3 = scalar_lea.hbm %s2816_s2, 1024 }
 0x292   : > { %p2064_p8 = scmp.ne.s32.totalorder %s2764_s18, %s2063_s28  ;;  %p2068_p13 = scmp.lt.u32.totalorder %s2764_s18, %s2816_s2 }
 0x293   : > { %p2069_p0 = scmp.lt.u32.totalorder %s2067_s3, %s2063_s28  ;;  %p2071_p2 = scmp.lt.u32.totalorder %s2063_s28, %s2764_s18 }
 0x294   : > { %p2065_p11 = pnand %p2064_p8, %p2197_p5 }
 0x295   : > { %p2070_p1 = por %p2069_p0, %p2068_p13 }
 0x296   : > { %p2066_p12 = pneg %p2065_p11 }
 0x297   : > { %p2072_p3 = por %p2071_p2, %p2070_p1 }
 0x299   : > { %p2073_p4 = pnand %p2072_p3, %p2066_p12 }
 0x29b   : > { %2076 = shalt.err (!%p2073_p4)
}
 0x29c   : > { %s2141_s6 = smov 256   ;;  %s2142_s7 = smov 16  }
 0x29d   : > { %1981 = dma.vmem_to_hbm [thread:$0]  (%p2197_p5), %s2754_s8, 512, %s2764_s18, %s1527_s23, %s2141_s6, %s2141_s6, %s2142_s7  }
 0x29e PF: > { %s1558_s15 = sand.u32 1, %s2107_s9   ;;  %p1984_p6 = pnand %p1641_p10, %p2208_p9 }
 0x29f   : > { %s1559_s12 = scalar_lea.sflag [#allocation4], %s1558_s15 }
 0x2a0   : > { %2102 = dma.done.wait (!%p1984_p6), %s1559_s12, 512  }
 0x2a1   : > { %2104 = vsyncadd (!%p1984_p6), %s1559_s12, 4294966784  ;;  %s15_s14 = sadd.s32 1, %s2127_s14   ;;  %s2819_s9 = smov %s2111_s10 }
 0x2a2   : > { %p12_p7 = scmp.ge.s32.totalorder %s15_s14, 4   ;;  %s2820_s10 = smov %s2115_s11 }
 0x2a3   : > { %s2821_s11 = smov %s2206_s21  ;;  %s2822_s12 = smov %s2123_s13 }
 0x2a4   : > { %s2823_s13 = smov %s2825_s17  ;;  %14 = sbr.rel (!%p12_p7) target bundleno = 4 (0x4), region = 117 }
 0x2ab   :  { %1564 = vsyncpa [#allocation4], 1 }
 0x2ac   :  { %1566 = vsyncpa [#allocation4 + $0x1], 1 }

</bundles_post_ra>
